<compile_context>
chip_gen: v6e
topology: v6e:2x2x1
jax: 0.10.0
libtpu: 0.0.40
codegen_flags: <defaults>
</compile_context>

<pallas_src>
import math
import functools

import jax
import jax.numpy as jnp
import numpy as np
from jax.experimental import pallas as pl
from jax.experimental.pallas import tpu as pltpu


_UNROLL = 8   # row copies / DMA issues per unrolled inner group


def _round_up(x, m):
    return ((x + m - 1) // m) * m


def _vmem_capacity_bytes():
    """Per-core VMEM capacity; conservative fallback if the query is unavailable."""
    try:
        return int(pltpu.get_tpu_info().vmem_capacity_bytes)
    except Exception:
        return 64 << 20            # v7x per-TensorCore VMEM (smallest generation)


def _hbm_gather_kernel(*refs, vocab_start, vocab_end, apply_mask):
    """One grid step: gather T embedding rows from the HBM weight partition straight
    into the pipelined (T, D) output block.

    refs (apply_mask=True):  ids_sm, ids_col_ref, w_hbm, out_ref, sem
    refs (apply_mask=False): ids_sm, w_hbm, out_ref, sem

      ids_sm      : (N_pad,) int32 in SMEM (scalar-prefetched) -- gather addresses.
      ids_col_ref : (T, 1) int32 in VMEM -- same ids, for the vectorized mask.
      w_hbm       : (V_local, D) weight partition left in HBM (pl.ANY).
      out_ref     : (T, D) output block in VMEM (DMA destination).
      sem         : shared byte-counting DMA semaphore.
    """
    if apply_mask:
        ids_sm, ids_col_ref, w_hbm, out_ref, sem = refs
    else:
        ids_sm, w_hbm, out_ref, sem = refs

    T = out_ref.shape[0]
    v_local = vocab_end - vocab_start
    base = pl.multiple_of(pl.program_id(0) * T, T)

    # Issue every row DMA before waiting on any so the DMA engines have many
    # outstanding transfers.  Outer scf.for over groups with a statically unrolled
    # inner body of _UNROLL issues: SMEM id loads, clamps and descriptor pushes
    # co-issue instead of serializing one per loop iteration.
    @pl.loop(0, T // _UNROLL)
    def _issue(g):
        t0 = pl.multiple_of(g * _UNROLL, _UNROLL)
        for u in range(_UNROLL):
            t = t0 + u
            gid = ids_sm[base + t]
            # Clamp so an out-of-partition / negative / padding id can never cause an
            # OOB DMA; such rows are zeroed below (TP>1) or are wrapper padding that
            # gets sliced off.
            lid = jnp.clip(gid - vocab_start, 0, v_local - 1)
            pltpu.make_async_copy(
                w_hbm.at[pl.ds(lid, 1), :],
                out_ref.at[pl.ds(t, 1), :],
                sem,
            ).start()

    # Single bulk wait: the T row copies all signal the same byte-counting semaphore
    # and together move exactly out_ref's T*D*itemsize bytes, so one wait sized by the
    # full output block retires every copy.  (A wait only needs the byte count; using
    # out_ref for both sides keeps the descriptor in-bounds even when T > V_local.)
    pltpu.make_async_copy(out_ref, out_ref, sem).wait()

    if apply_mask:
        # Megatron TP>1 semantics: rows whose id falls outside this partition's
        # [vocab_start, vocab_end) are zeroed before the cross-rank reduction.
        ids_col = ids_col_ref[...]                                   # (T, 1)
        valid = jnp.logical_and(ids_col >= vocab_start, ids_col < vocab_end)
        rows = out_ref[...]
        out_ref[...] = jnp.where(valid, rows, jnp.zeros_like(rows))


def _vmem_gather_kernel(ids_sm, w_ref, out_ref, *, vocab_start, vocab_end, apply_mask):
    """One grid step: gather T rows from the VMEM-resident weight partition with
    dynamic-slice loads (no per-row DMA fixed overhead).  Used when the whole
    (V_local, D) slab fits comfortably in VMEM."""
    T = out_ref.shape[0]
    v_local = vocab_end - vocab_start
    base = pl.multiple_of(pl.program_id(0) * T, T)

    @pl.loop(0, T // _UNROLL)
    def _copy(g):
        t0 = pl.multiple_of(g * _UNROLL, _UNROLL)
        for u in range(_UNROLL):
            t = t0 + u
            gid = ids_sm[base + t]
            lid = jnp.clip(gid - vocab_start, 0, v_local - 1)
            row = w_ref[pl.ds(lid, 1), :]                            # (1, D)
            if apply_mask:
                valid = jnp.logical_and(gid >= vocab_start, gid < vocab_end)
                row = row * valid.astype(row.dtype)   # 0/1 scale == Megatron mask
            out_ref[pl.ds(t, 1), :] = row


class VocabParallelEmbedding:
    """JAX/Pallas port of Megatron's VocabParallelEmbedding (forward only)."""

    MAX_TOKEN_TILE = 512       # tokens per grid step (amortizes per-step overhead)
    OUT_VMEM_BUDGET = 8 << 20  # bytes for the double-buffered (T, D) output blocks

    def __init__(self, num_embeddings, embedding_dim, *, rank=0, world_size=1,
                 params_dtype=jnp.float32, seed=0):
        assert num_embeddings % world_size == 0
        self.num_embeddings = num_embeddings
        self.embedding_dim = embedding_dim
        self.tensor_model_parallel_size = world_size

        per_partition = num_embeddings // world_size
        self.vocab_start_index = rank * per_partition
        self.vocab_end_index = self.vocab_start_index + per_partition
        self.num_embeddings_per_partition = per_partition

        # Deterministic xavier_normal_ init of the *master* weight, then take this
        # rank's contiguous slab along the vocab (partition_dim=0) axis, mirroring
        # _initialize_affine_weight_cpu with stride=1.
        fan_out, fan_in = num_embeddings, embedding_dim
        std = math.sqrt(2.0 / float(fan_in + fan_out))
        key = jax.random.PRNGKey(seed)
        master_weight = std * jax.random.normal(
            key, (num_embeddings, embedding_dim), dtype=jnp.float32)
        self.weight = master_weight[
            self.vocab_start_index:self.vocab_end_index].astype(params_dtype)

    def __call__(self, input_, *, validate_ids=False, force_hbm_gather=False):
        # Megatron raises on out-of-vocab ids; that check forces a device->host sync
        # and breaks jit tracing, so it is opt-in here (and checks both bounds).
        # Without it, OOV / negative ids are clamped inside the kernel (never OOB).
        if validate_ids:
            bad = jnp.logical_or(input_ < 0, input_ >= self.num_embeddings)
            if bool(jnp.any(bad)):
                raise ValueError(
                    "There is an input id in the input that is outside the vocabulary."
                    f"\nnum_embeddings: {self.num_embeddings}")

        orig_shape = input_.shape
        ids = input_.astype(jnp.int32).reshape(-1)               # (N,)
        N = ids.shape[0]
        D = self.embedding_dim
        V_local = self.num_embeddings_per_partition
        w = self.weight
        itemsize = jnp.dtype(w.dtype).itemsize
        # Sublane multiple of the output dtype: sub-32-bit dtypes pack along sublanes,
        # so bf16 tiles need 16 rows and int8/fp8 need 32 for an unmasked lane-dense
        # output store.
        sub = {4: 8, 2: 16, 1: 32}.get(itemsize, 8)

        cap = _vmem_capacity_bytes()
        weight_bytes = V_local * D * itemsize

        # Token tile: as large as the output double-buffer budget allows (bigger tiles
        # amortize the ~0.35us/step pipeline overhead and keep more row transfers in
        # flight), rounded to the sublane multiple, capped for tiny inputs.  Always a
        # multiple of _UNROLL because sub >= 8.
        t_budget = max(sub, (self.OUT_VMEM_BUDGET // (2 * D * itemsize)) // sub * sub)
        T = max(sub, min(self.MAX_TOKEN_TILE, t_budget, _round_up(N, sub)))

        N_pad = _round_up(N, T)
        if N_pad != N:
            ids = jnp.concatenate([ids, jnp.zeros((N_pad - N,), dtype=jnp.int32)])

        apply_mask = self.tensor_model_parallel_size > 1
        # VMEM-resident weight path when the slab (counted twice: BlockSpec inputs are
        # double-buffered) fits well inside VMEM.  Per-row HBM DMAs of a few hundred
        # bytes are fixed-overhead bound, so for small V_local*D (and on low-HBM-BW
        # parts such as v5e) the resident slab is the faster gather.
        use_vmem_weight = (not force_hbm_gather) and (2 * weight_bytes <= cap // 3)

        if use_vmem_weight:
            kernel = functools.partial(
                _vmem_gather_kernel,
                vocab_start=self.vocab_start_index,
                vocab_end=self.vocab_end_index,
                apply_mask=apply_mask)
            in_specs = [pl.BlockSpec((V_local, D), lambda i, ids_sm: (0, 0))]
            operands = (ids, w)
            scratch_shapes = []
            vmem_use = 2 * weight_bytes + 2 * T * D * itemsize
        else:
            kernel = functools.partial(
                _hbm_gather_kernel,
                vocab_start=self.vocab_start_index,
                vocab_end=self.vocab_end_index,
                apply_mask=apply_mask)
            if apply_mask:
                in_specs = [
                    pl.BlockSpec((T, 1), lambda i, ids_sm: (i, 0)),   # ids for the mask
                    pl.BlockSpec(memory_space=pl.ANY),                # weight stays in HBM
                ]
                operands = (ids, ids.reshape(N_pad, 1), w)
            else:
                in_specs = [pl.BlockSpec(memory_space=pl.ANY)]        # weight stays in HBM
                operands = (ids, w)
            scratch_shapes = [pltpu.SemaphoreType.DMA]                # shared DMA sem
            vmem_use = 2 * T * D * itemsize + (2 * T * 4 if apply_mask else 0)

        vmem_limit = int(max(32 << 20, vmem_use + (8 << 20)))

        out = pl.pallas_call(
            kernel,
            out_shape=jax.ShapeDtypeStruct((N_pad, D), w.dtype),
            grid_spec=pltpu.PrefetchScalarGridSpec(
                num_scalar_prefetch=1,                                # ids -> SMEM
                grid=(N_pad // T,),
                in_specs=in_specs,
                out_specs=pl.BlockSpec((T, D), lambda i, ids_sm: (i, 0)),
                scratch_shapes=scratch_shapes,
            ),
            compiler_params=pltpu.CompilerParams(
                # No cross-step scratch state, so the token-tile axis is safely
                # "parallel" (sharded across TensorCores on multi-core chips).
                dimension_semantics=("parallel",),
                vmem_limit_bytes=vmem_limit,
            ),
        )(*operands)

        # reduce_from_tensor_model_parallel_region: identity for world_size == 1.
        # TODO(synk): jax.lax.psum over the TP axis when world_size > 1.
        out = out[:N].reshape(*orig_shape, D)
        # TODO(synk): optional embed LayerNorm (default Megatron args disable it).
        return out


if __name__ == "__main__":
    num_embeddings = 512     # vocab size
    embedding_dim = 128      # hidden size
    B, S = 2, 8              # batch, sequence

    key = jax.random.PRNGKey(0)
    input_ids = jax.random.randint(key, (B, S), 0, num_embeddings, dtype=jnp.int32)

    # --- world_size == 1: plain lookup, VMEM-resident weight path ----------------
    emb = VocabParallelEmbedding(num_embeddings, embedding_dim,
                                 rank=0, world_size=1, seed=0)
    ref = jnp.take(emb.weight, input_ids.reshape(-1), axis=0).reshape(B, S, embedding_dim)
    out = jax.block_until_ready(emb(input_ids))
    np.testing.assert_allclose(np.asarray(out), np.asarray(ref), rtol=0, atol=0)

    # --- same lookup via the HBM DMA-gather path ----------------------------------
    out_hbm = jax.block_until_ready(emb(input_ids, force_hbm_gather=True))
    np.testing.assert_allclose(np.asarray(out_hbm), np.asarray(ref), rtol=0, atol=0)

    # --- padding path: token count not a multiple of the tile (HBM path) ---------
    ids_odd = input_ids.reshape(-1)[:13].reshape(1, 13)
    out_odd = jax.block_until_ready(emb(ids_odd, force_hbm_gather=True))
    ref_odd = jnp.take(emb.weight, ids_odd.reshape(-1), axis=0).reshape(1, 13, embedding_dim)
    np.testing.assert_allclose(np.asarray(out_odd), np.asarray(ref_odd), rtol=0, atol=0)

    # --- world_size == 2: partition masking + (simulated) all-reduce -------------
    emb0 = VocabParallelEmbedding(num_embeddings, embedding_dim,
                                  rank=0, world_size=2, seed=0)
    emb1 = VocabParallelEmbedding(num_embeddings, embedding_dim,
                                  rank=1, world_size=2, seed=0)
    # rank 0 exercises the masked VMEM path, rank 1 the masked HBM path; the
    # host-side add stands in for reduce_from_tensor_model_parallel_region.
    out_tp = jax.block_until_ready(
        emb0(input_ids) + emb1(input_ids, force_hbm_gather=True))
    full_w = jnp.concatenate([emb0.weight, emb1.weight], axis=0)
    ref_tp = jnp.take(full_w, input_ids.reshape(-1), axis=0).reshape(B, S, embedding_dim)
    np.testing.assert_allclose(np.asarray(out_tp), np.asarray(ref_tp), rtol=0, atol=0)

    print("KERNEL_OK")
</pallas_src>

<mosaic_0001>
module attributes {stable_mosaic.version = 11 : i64} {
  func.func @_vmem_gather_kernel(%arg0: i32, %arg1: memref<16xi32, #tpu.memory_space<smem>>, %arg2: memref<512x128xf32, #tpu.memory_space<vmem>>, %arg3: memref<16x128xf32, #tpu.memory_space<vmem>>) attributes {dimension_semantics = [#tpu.dimension_semantics<parallel>], iteration_bounds = array<i64: 1>, scalar_prefetch = 1 : i64, scratch_operands = 0 : i64, tpu.core_type = #tpu.core_type<tc>, window_params = [{pipeline_mode = #tpu.pipeline_mode<synchronous>, transform_indices = @transform_0, window_bounds = array<i64: 512, 128>}, {transform_indices = @transform_1, window_bounds = array<i64: 16, 128>}]} {
    %c16_i32 = arith.constant 16 : i32
    %0 = arith.muli %arg0, %c16_i32 : i32
    %1 = tpu.assume_multiple %0, 16 : i32
    %c0_i32 = arith.constant 0 : i32
    %c2_i32 = arith.constant 2 : i32
    %2 = arith.addi %c0_i32, %c2_i32 : i32
    %c1_i32 = arith.constant 1 : i32
    scf.for %arg4 = %c0_i32 to %2 step %c1_i32  : i32 {
      %c1_i32_1 = arith.constant 1 : i32
      %3 = arith.muli %arg4, %c1_i32_1 : i32
      %c0_i32_2 = arith.constant 0 : i32
      %4 = arith.addi %c0_i32_2, %3 : i32
      %c8_i32 = arith.constant 8 : i32
      %5 = arith.muli %4, %c8_i32 : i32
      %6 = tpu.assume_multiple %5, 8 : i32
      %c0_i32_3 = arith.constant 0 : i32
      %7 = arith.addi %6, %c0_i32_3 : i32
      %8 = arith.addi %1, %7 : i32
      %9 = arith.index_cast %8 : i32 to index
      %10 = memref.load %arg1[%9] : memref<16xi32, #tpu.memory_space<smem>>
      %c0_i32_4 = arith.constant 0 : i32
      %11 = arith.subi %10, %c0_i32_4 : i32
      %c0_i32_5 = arith.constant 0 : i32
      %c511_i32 = arith.constant 511 : i32
      %12 = arith.maxsi %c0_i32_5, %11 : i32
      %13 = arith.minsi %c511_i32, %12 : i32
      %14 = arith.index_cast %13 : i32 to index
      %c0 = arith.constant 0 : index
      %15 = vector.load %arg2[%14, %c0] : memref<512x128xf32, #tpu.memory_space<vmem>>, vector<1x128xf32>
      %16 = arith.index_cast %7 : i32 to index
      %c0_6 = arith.constant 0 : index
      %17 = vector.load %arg3[%16, %c0_6] : memref<16x128xf32, #tpu.memory_space<vmem>>, vector<1x128xf32>
      tpu.vector_store %arg3[%16, %c0_6], %15 {strides = array<i32>} : memref<16x128xf32, #tpu.memory_space<vmem>>, vector<1x128xf32>,
      %c1_i32_7 = arith.constant 1 : i32
      %18 = arith.addi %6, %c1_i32_7 : i32
      %19 = arith.addi %1, %18 : i32
      %20 = arith.index_cast %19 : i32 to index
      %21 = memref.load %arg1[%20] : memref<16xi32, #tpu.memory_space<smem>>
      %c0_i32_8 = arith.constant 0 : i32
      %22 = arith.subi %21, %c0_i32_8 : i32
      %c0_i32_9 = arith.constant 0 : i32
      %c511_i32_10 = arith.constant 511 : i32
      %23 = arith.maxsi %c0_i32_9, %22 : i32
      %24 = arith.minsi %c511_i32_10, %23 : i32
      %25 = arith.index_cast %24 : i32 to index
      %c0_11 = arith.constant 0 : index
      %26 = vector.load %arg2[%25, %c0_11] : memref<512x128xf32, #tpu.memory_space<vmem>>, vector<1x128xf32>
      %27 = arith.index_cast %18 : i32 to index
      %c0_12 = arith.constant 0 : index
      %28 = vector.load %arg3[%27, %c0_12] : memref<16x128xf32, #tpu.memory_space<vmem>>, vector<1x128xf32>
      tpu.vector_store %arg3[%27, %c0_12], %26 {strides = array<i32>} : memref<16x128xf32, #tpu.memory_space<vmem>>, vector<1x128xf32>,
      %c2_i32_13 = arith.constant 2 : i32
      %29 = arith.addi %6, %c2_i32_13 : i32
      %30 = arith.addi %1, %29 : i32
      %31 = arith.index_cast %30 : i32 to index
      %32 = memref.load %arg1[%31] : memref<16xi32, #tpu.memory_space<smem>>
      %c0_i32_14 = arith.constant 0 : i32
      %33 = arith.subi %32, %c0_i32_14 : i32
      %c0_i32_15 = arith.constant 0 : i32
      %c511_i32_16 = arith.constant 511 : i32
      %34 = arith.maxsi %c0_i32_15, %33 : i32
      %35 = arith.minsi %c511_i32_16, %34 : i32
      %36 = arith.index_cast %35 : i32 to index
      %c0_17 = arith.constant 0 : index
      %37 = vector.load %arg2[%36, %c0_17] : memref<512x128xf32, #tpu.memory_space<vmem>>, vector<1x128xf32>
      %38 = arith.index_cast %29 : i32 to index
      %c0_18 = arith.constant 0 : index
      %39 = vector.load %arg3[%38, %c0_18] : memref<16x128xf32, #tpu.memory_space<vmem>>, vector<1x128xf32>
      tpu.vector_store %arg3[%38, %c0_18], %37 {strides = array<i32>} : memref<16x128xf32, #tpu.memory_space<vmem>>, vector<1x128xf32>,
      %c3_i32 = arith.constant 3 : i32
      %40 = arith.addi %6, %c3_i32 : i32
      %41 = arith.addi %1, %40 : i32
      %42 = arith.index_cast %41 : i32 to index
      %43 = memref.load %arg1[%42] : memref<16xi32, #tpu.memory_space<smem>>
      %c0_i32_19 = arith.constant 0 : i32
      %44 = arith.subi %43, %c0_i32_19 : i32
      %c0_i32_20 = arith.constant 0 : i32
      %c511_i32_21 = arith.constant 511 : i32
      %45 = arith.maxsi %c0_i32_20, %44 : i32
      %46 = arith.minsi %c511_i32_21, %45 : i32
      %47 = arith.index_cast %46 : i32 to index
      %c0_22 = arith.constant 0 : index
      %48 = vector.load %arg2[%47, %c0_22] : memref<512x128xf32, #tpu.memory_space<vmem>>, vector<1x128xf32>
      %49 = arith.index_cast %40 : i32 to index
      %c0_23 = arith.constant 0 : index
      %50 = vector.load %arg3[%49, %c0_23] : memref<16x128xf32, #tpu.memory_space<vmem>>, vector<1x128xf32>
      tpu.vector_store %arg3[%49, %c0_23], %48 {strides = array<i32>} : memref<16x128xf32, #tpu.memory_space<vmem>>, vector<1x128xf32>,
      %c4_i32 = arith.constant 4 : i32
      %51 = arith.addi %6, %c4_i32 : i32
      %52 = arith.addi %1, %51 : i32
      %53 = arith.index_cast %52 : i32 to index
      %54 = memref.load %arg1[%53] : memref<16xi32, #tpu.memory_space<smem>>
      %c0_i32_24 = arith.constant 0 : i32
      %55 = arith.subi %54, %c0_i32_24 : i32
      %c0_i32_25 = arith.constant 0 : i32
      %c511_i32_26 = arith.constant 511 : i32
      %56 = arith.maxsi %c0_i32_25, %55 : i32
      %57 = arith.minsi %c511_i32_26, %56 : i32
      %58 = arith.index_cast %57 : i32 to index
      %c0_27 = arith.constant 0 : index
      %59 = vector.load %arg2[%58, %c0_27] : memref<512x128xf32, #tpu.memory_space<vmem>>, vector<1x128xf32>
      %60 = arith.index_cast %51 : i32 to index
      %c0_28 = arith.constant 0 : index
      %61 = vector.load %arg3[%60, %c0_28] : memref<16x128xf32, #tpu.memory_space<vmem>>, vector<1x128xf32>
      tpu.vector_store %arg3[%60, %c0_28], %59 {strides = array<i32>} : memref<16x128xf32, #tpu.memory_space<vmem>>, vector<1x128xf32>,
      %c5_i32 = arith.constant 5 : i32
      %62 = arith.addi %6, %c5_i32 : i32
      %63 = arith.addi %1, %62 : i32
      %64 = arith.index_cast %63 : i32 to index
      %65 = memref.load %arg1[%64] : memref<16xi32, #tpu.memory_space<smem>>
      %c0_i32_29 = arith.constant 0 : i32
      %66 = arith.subi %65, %c0_i32_29 : i32
      %c0_i32_30 = arith.constant 0 : i32
      %c511_i32_31 = arith.constant 511 : i32
      %67 = arith.maxsi %c0_i32_30, %66 : i32
      %68 = arith.minsi %c511_i32_31, %67 : i32
      %69 = arith.index_cast %68 : i32 to index
      %c0_32 = arith.constant 0 : index
      %70 = vector.load %arg2[%69, %c0_32] : memref<512x128xf32, #tpu.memory_space<vmem>>, vector<1x128xf32>
      %71 = arith.index_cast %62 : i32 to index
      %c0_33 = arith.constant 0 : index
      %72 = vector.load %arg3[%71, %c0_33] : memref<16x128xf32, #tpu.memory_space<vmem>>, vector<1x128xf32>
      tpu.vector_store %arg3[%71, %c0_33], %70 {strides = array<i32>} : memref<16x128xf32, #tpu.memory_space<vmem>>, vector<1x128xf32>,
      %c6_i32 = arith.constant 6 : i32
      %73 = arith.addi %6, %c6_i32 : i32
      %74 = arith.addi %1, %73 : i32
      %75 = arith.index_cast %74 : i32 to index
      %76 = memref.load %arg1[%75] : memref<16xi32, #tpu.memory_space<smem>>
      %c0_i32_34 = arith.constant 0 : i32
      %77 = arith.subi %76, %c0_i32_34 : i32
      %c0_i32_35 = arith.constant 0 : i32
      %c511_i32_36 = arith.constant 511 : i32
      %78 = arith.maxsi %c0_i32_35, %77 : i32
      %79 = arith.minsi %c511_i32_36, %78 : i32
      %80 = arith.index_cast %79 : i32 to index
      %c0_37 = arith.constant 0 : index
      %81 = vector.load %arg2[%80, %c0_37] : memref<512x128xf32, #tpu.memory_space<vmem>>, vector<1x128xf32>
      %82 = arith.index_cast %73 : i32 to index
      %c0_38 = arith.constant 0 : index
      %83 = vector.load %arg3[%82, %c0_38] : memref<16x128xf32, #tpu.memory_space<vmem>>, vector<1x128xf32>
      tpu.vector_store %arg3[%82, %c0_38], %81 {strides = array<i32>} : memref<16x128xf32, #tpu.memory_space<vmem>>, vector<1x128xf32>,
      %c7_i32 = arith.constant 7 : i32
      %84 = arith.addi %6, %c7_i32 : i32
      %85 = arith.addi %1, %84 : i32
      %86 = arith.index_cast %85 : i32 to index
      %87 = memref.load %arg1[%86] : memref<16xi32, #tpu.memory_space<smem>>
      %c0_i32_39 = arith.constant 0 : i32
      %88 = arith.subi %87, %c0_i32_39 : i32
      %c0_i32_40 = arith.constant 0 : i32
      %c511_i32_41 = arith.constant 511 : i32
      %89 = arith.maxsi %c0_i32_40, %88 : i32
      %90 = arith.minsi %c511_i32_41, %89 : i32
      %91 = arith.index_cast %90 : i32 to index
      %c0_42 = arith.constant 0 : index
      %92 = vector.load %arg2[%91, %c0_42] : memref<512x128xf32, #tpu.memory_space<vmem>>, vector<1x128xf32>
      %93 = arith.index_cast %84 : i32 to index
      %c0_43 = arith.constant 0 : index
      %94 = vector.load %arg3[%93, %c0_43] : memref<16x128xf32, #tpu.memory_space<vmem>>, vector<1x128xf32>
      tpu.vector_store %arg3[%93, %c0_43], %92 {strides = array<i32>} : memref<16x128xf32, #tpu.memory_space<vmem>>, vector<1x128xf32>,
    }
    %c2_i32_0 = arith.constant 2 : i32
    return
  }
  func.func @transform_0(%arg0: i32, %arg1: memref<16xi32, #tpu.memory_space<smem>>) -> (i32, i32) {
    %c0_i32 = arith.constant 0 : i32
    %c0_i32_0 = arith.constant 0 : i32
    %c0_i32_1 = arith.constant 0 : i32
    return %c0_i32, %c0_i32_0 : i32, i32
  }
  func.func @transform_1(%arg0: i32, %arg1: memref<16xi32, #tpu.memory_space<smem>>) -> (i32, i32) {
    %c0_i32 = arith.constant 0 : i32
    %c0_i32_0 = arith.constant 0 : i32
    return %arg0, %c0_i32 : i32, i32
  }
}

</mosaic_0001>

<bundles_post_ra>
// kernel: tpu_custom_call.1
= control target key start
LH: loop header
LB: loop body
LE: loop exit
PB: predicated region body
PF: predicated region fallthrough
CT: control target
= control target key end

     0   :  { %s322_s9 = smov [#allocation3]   ;;  %s406_s0 = inlined_call_operand.hbm [shape: s32[16], index: 0, kind: input, shape index: {}]   ;;  %s407_s1 = inlined_call_operand.hbm [shape: f32[512,128], index: 1, kind: input, shape index: {}]   ;;  %s408_s2 = inlined_call_operand.hbm [shape: f32[16,128], index: 2, kind: output, shape index: {}]  }
   0x1   :  { %8 = dma.hbm_to_smem %s406_s0, 16, %s322_s9, [#allocation2] }
   0x2   :  { %312 = dma.done.wait [#allocation2], 16 }
   0x3   :  { %313 = vsyncadd [#allocation2], 4294967280 }
   0x4   :  { %10 = sfence }
   0x5   :  { %11 = vsyncpa [#allocation5], 0 }
   0x6   :  { %12 = vsyncpa [#allocation6], 0  ;;  %s323_s12 = smov [#allocation4]  }
   0x7   :  { %s18_s13 = sshll.u32 %s323_s12, 4  ;;  %s19_s13 = int_to_ptr.vmem [resolvable:$true] %s18_s13 }
   0x8   :  { %s276_s14 = scalar_lea.vmem %s19_s13, 8192  ;;  %p281_p1 = scmp.lt.s32.totalorder %s19_s13, %s19_s13 }
   0x9   :  { %p277_p0 = scmp.ne.s32.totalorder %s19_s13, %s276_s14  ;;  %p282_p2 = scmp.lt.s32.totalorder %s276_s14, %s276_s14 }
   0xb   :  { %p283_p3 = por %p282_p2, %p281_p1 }
   0xd   :  { %p284_p4 = pnand %p283_p3, %p277_p0 }
   0xf   :  { %287 = shalt.err (!%p284_p4)
}
  0x10   :  { %s324_s15 = smov 128   ;;  %s325_s16 = smov 8  }
  0x11   :  { %24 = dma.hbm_to_vmem [thread:$0]  %s407_s1, 8192, %s19_s13, [#allocation5], %s324_s15, %s324_s15, %s325_s16  }
  0x12   :  { %314 = dma.done.wait [#allocation5], 8192  }
  0x13   :  { %315 = vsyncadd [#allocation5], 4294959104  ;;  %s351_s18 = smov 0  }
  0x14 LB: > { %s357_s19 = sshll.u32 %s320_s18, 3  ;;  %s34_s18 = sadd.s32 1, %s320_s18   ;;  %s320_s18 = sphi %s351_s18, %s34_s18  }
  0x15   : > { %s37_s1 = sld [smem:[#allocation3 + %s357_s19]]  ;;  %s46_s20 = sadd.s32 1, %s357_s19 }
  0x16   : > { %s57_s21 = sadd.s32 2, %s357_s19  ;;  %s48_s22 = sld [smem:[#allocation3 + %s46_s20]] }
  0x17   : > { %s68_s23 = sadd.s32 3, %s357_s19  ;;  %s59_s24 = sld [smem:[#allocation3 + %s57_s21]] }
  0x18   : > { %s79_s25 = sadd.s32 4, %s357_s19  ;;  %s364_s26 = sld [smem:[#allocation3 + %s68_s23]] }
  0x19   : > { %s90_s27 = sadd.s32 5, %s357_s19  ;;  %s367_s28 = sld [smem:[#allocation3 + %s79_s25]] }
  0x1a   : > { %s101_s29 = sadd.s32 6, %s357_s19  ;;  %s370_s30 = sld [smem:[#allocation3 + %s90_s27]] }
  0x1b   : > { %p38_p5 = scmp.gt.s32.totalorder %s37_s1, 0  ;;  %p177_p6 = scmp.lt.s32.totalorder %s37_s1, 511 }
  0x1c   : > { %s112_s3 = sadd.s32 7, %s357_s19  ;;  %p49_p7 = scmp.gt.s32.totalorder %s48_s22, 0 }
  0x1d   : > { %s410_s1 = smov (!%p38_p5, %s37_s1), 0  ;;  %p182_p8 = scmp.lt.s32.totalorder %s48_s22, 511 }
  0x1e   : > { %s412_s1 = smov (!%p177_p6, %s410_s1), 511  ;;  %s414_s22 = smov (!%p49_p7, %s48_s22), 0 }
  0x1f   : > { %p60_p9 = scmp.gt.s32.totalorder %s59_s24, 0  ;;  %s42_s4 = scalar_lea.vmem [#allocation4], %s412_s1 }
  0x20   : > { %v43_v0 = vld [vmem:[%s42_s4] sm:$0x1]  ;;  %s416_s22 = smov (!%p182_p8, %s414_s22), 511  ;;  %s374_s5 = scalar_lea.vmem [#allocation7], %s357_s19 }
  0x21   : > { %45 = vst [vmem:[%s374_s5] sm:$0x1] %v43_v0  ;;  %s61_s6 = scalar_select %p60_p9, %s59_s24, 0 }
  0x22   : > { %p189_p10 = scmp.lt.s32.totalorder %s59_s24, 511  ;;  %s53_s7 = scalar_lea.vmem [#allocation4], %s416_s22 }
  0x23   : > { %v54_v1 = vld [vmem:[%s53_s7] sm:$0x1]  ;;  %p71_p11 = scmp.gt.s32.totalorder %s364_s26, 0  ;;  %p196_p12 = scmp.lt.s32.totalorder %s364_s26, 511 }
  0x24   : > { %188 = vst [vmem:[%s374_s5 + $0x1] sm:$0x1] %v54_v1  ;;  %s418_s6 = smov (!%p189_p10, %s61_s6), 511  ;;  %p82_p13 = scmp.gt.s32.totalorder %s367_s28, 0 }
  0x25   : > { %s420_s26 = smov (!%p71_p11, %s364_s26), 0  ;;  %s64_s8 = scalar_lea.vmem [#allocation4], %s418_s6 }
  0x26   : > { %v65_v2 = vld [vmem:[%s64_s8] sm:$0x1]  ;;  %s422_s26 = smov (!%p196_p12, %s420_s26), 511  ;;  %p203_p0 = scmp.lt.s32.totalorder %s367_s28, 511 }
  0x27   : > { %195 = vst [vmem:[%s374_s5 + $0x2] sm:$0x1] %v65_v2  ;;  %s83_s9 = scalar_select %p82_p13, %s367_s28, 0 }
  0x28   : > { %s75_s10 = scalar_lea.vmem [#allocation4], %s422_s26  ;;  %p93_p1 = scmp.gt.s32.totalorder %s370_s30, 0 }
  0x29   : > { %v76_v3 = vld [vmem:[%s75_s10] sm:$0x1]  ;;  %p210_p2 = scmp.lt.s32.totalorder %s370_s30, 511  ;;  %s424_s9 = smov (!%p203_p0, %s83_s9), 511 }
  0x2a   : > { %202 = vst [vmem:[%s374_s5 + $0x3] sm:$0x1] %v76_v3  ;;  %s426_s30 = smov (!%p93_p1, %s370_s30), 0  ;;  %s103_s11 = sld [smem:[#allocation3 + %s101_s29]] }
  0x2b   : > { %s86_s12 = scalar_lea.vmem [#allocation4], %s424_s9  ;;  %s428_s30 = smov (!%p210_p2, %s426_s30), 511 }
  0x2c   : > { %v87_v4 = vld [vmem:[%s86_s12] sm:$0x1]  ;;  %s114_s13 = sld [smem:[#allocation3 + %s112_s3]]  ;;  %s97_s14 = scalar_lea.vmem [#allocation4], %s428_s30 }
  0x2d   : > { %209 = vst [vmem:[%s374_s5 + $0x4] sm:$0x1] %v87_v4  ;;  %v98_v5 = vld [vmem:[%s97_s14] sm:$0x1]  ;;  %p31_p7 = scmp.ge.s32.totalorder %s34_s18, 2  }
  0x2e   : > { %216 = vst [vmem:[%s374_s5 + $0x5] sm:$0x1] %v98_v5  ;;  %s326_s19 = smov (%p31_p7), [#allocation7]  }
  0x2f   :  { %s128_s1 = sshll.u32 (%p31_p7), %s326_s19, 4  ;;  %s129_s1 = int_to_ptr.vmem [resolvable:$true] %s128_s1 }
  0x30   : > { %p104_p3 = scmp.gt.s32.totalorder %s103_s11, 0  ;;  %p217_p4 = scmp.lt.s32.totalorder %s103_s11, 511 }
  0x31   :  { %s288_s20 = scalar_lea.vmem (%p31_p7), %s129_s1, 256  ;;  %p293_p9 = scmp.lt.s32.totalorder (%p31_p7), %s129_s1, %s129_s1 }
  0x32   : > { %s430_s11 = smov (!%p104_p3, %s103_s11), 0  ;;  %p115_p5 = scmp.gt.s32.totalorder %s114_s13, 0 }
  0x33   : > { %p224_p6 = scmp.lt.s32.totalorder %s114_s13, 511  ;;  %s432_s11 = smov (!%p217_p4, %s430_s11), 511 }
  0x34   : > { %s434_s13 = smov (!%p115_p5, %s114_s13), 0  ;;  %s108_s0 = scalar_lea.vmem [#allocation4], %s432_s11 }
  0x35   : > { %v109_v6 = vld [vmem:[%s108_s0] sm:$0x1]  ;;  %s436_s13 = smov (!%p224_p6, %s434_s13), 511  ;;  %33 = sbr.rel (!%p31_p7) target bundleno = 20 (0x14), region = 51 }
  0x36   : > { %223 = vst [vmem:[%s374_s5 + $0x6] sm:$0x1] %v109_v6  ;;  %s119_s17 = scalar_lea.vmem [#allocation4], %s436_s13  ;;  %p289_p8 = scmp.ne.s32.totalorder (%p31_p7), %s129_s1, %s288_s20 }
  0x37   : > { %v120_v7 = vld [vmem:[%s119_s17] sm:$0x1]  ;;  %p294_p10 = scmp.lt.s32.totalorder (%p31_p7), %s288_s20, %s288_s20 }
  0x38   : > { %230 = vst [vmem:[%s374_s5 + $0x7] sm:$0x1] %v120_v7 }
  0x39   :  { %p295_p11 = por (%p31_p7), %p294_p10, %p293_p9 }
  0x3b   :  { %p296_p12 = pnand %p295_p11, %p289_p8 }
  0x3d   :  { %299 = shalt.err (!%p296_p12)
}
  0x3e   :  { %134 = dma.vmem_to_hbm [thread:$0]  %s129_s1, 256, %s408_s2, [#allocation6], %s324_s15, %s324_s15, %s325_s16  }
  0x3f   :  { %316 = dma.done.wait [#allocation6], 256  }
  0x40   :  { %317 = vsyncadd [#allocation6], 4294967040 }
  0x41   :  { %138 = vsyncpa [#allocation5], 1 }
  0x42   :  { %139 = vsyncpa [#allocation6], 1 }

</bundles_post_ra>
